<compile_context>
chip_gen: v5e
topology: v5e:2x2
jax: 0.10.0
libtpu: 0.0.40
codegen_flags: <defaults>
</compile_context>

<pallas_src>
import jax
import jax.numpy as jnp
from jax.experimental import pallas as pl
from jax.experimental.pallas import tpu as pltpu


def _param_sigmoid_kernel(wb_ref, x_ref, o_ref):
    # wb_ref: SMEM (2,) f32 -> [w, b];  x_ref / o_ref: VMEM tile (rows, lanes).
    w = wb_ref[0]
    b = wb_ref[1]
    # f32 compute is safe on every generation (v5e has no bf16 VPU/EUP); the
    # kernel is DMA-bound so the in-register upcast is free.
    z = x_ref[...].astype(jnp.float32) * w + b
    o_ref[...] = jax.nn.sigmoid(z).astype(o_ref.dtype)


_LANE_CHOICES = (1024, 512, 256, 128)


def _device_kind():
    try:
        return jax.devices()[0].device_kind.lower()
    except Exception:  # pragma: no cover - defensive (e.g. no devices yet)
        return ""


def _tile_config(kind):
    """Returns (tile_bytes_per_buffer, vmem_limit_bytes_or_None, two_core)."""
    if "v7" in kind:
        # ~3.2 TB/s HBM per TC: use bigger tiles so the ~0.35us/step overhead
        # stays small; 4 buffers x 6 MiB = 24 MiB, limit 40 MiB << 64 MiB phys.
        return 6 * 1024 * 1024, 40 * 1024 * 1024, True
    if "v6" in kind:
        # 4 buffers x 4 MiB = 16 MiB, fits the 32 MiB scoped-VMEM default.
        return 4 * 1024 * 1024, None, False
    # v5e / unknown: 4 buffers x 2 MiB = 8 MiB, fits the 16 MiB default.
    return 2 * 1024 * 1024, None, False


def _run_pallas_2d(x2d, wb, out_dtype, tile_bytes, vmem_limit, two_core):
    """Runs the kernel over an aligned lane-dense slab (m, lanes)."""
    m, lanes = x2d.shape
    itemsize = jnp.dtype(x2d.dtype).itemsize
    # Sublane granule so packed dtypes stay tile-aligned (f32:8, bf16:16, i8:32).
    granule = max(8, 32 // itemsize)

    tile_rows = max(granule, tile_bytes // (lanes * itemsize))
    tile_rows = max(granule, (tile_rows // granule) * granule)

    if two_core and m >= 2 * granule:
        # v7x megacore: never collapse to a single block; give each TC >= 1.
        half = ((pl.cdiv(m, 2) + granule - 1) // granule) * granule
        tile_rows = min(tile_rows, half)

    if tile_rows >= m:
        tile_rows = m  # single full-extent block along rows (always legal)

    grid = (pl.cdiv(m, tile_rows),)  # ragged last block handled by Pallas

    cp_kwargs = dict(dimension_semantics=("parallel",))
    if vmem_limit is not None:
        cp_kwargs["vmem_limit_bytes"] = vmem_limit

    return pl.pallas_call(
        _param_sigmoid_kernel,
        out_shape=jax.ShapeDtypeStruct((m, lanes), out_dtype),
        grid=grid,
        in_specs=[
            pl.BlockSpec(memory_space=pltpu.MemorySpace.SMEM),   # (w, b)
            pl.BlockSpec((tile_rows, lanes), lambda i: (i, 0)),  # x tile
        ],
        out_specs=pl.BlockSpec((tile_rows, lanes), lambda i: (i, 0)),
        compiler_params=pltpu.CompilerParams(**cp_kwargs),
    )(wb, x2d)


def param_sigmoid(x, w, b, *, min_pallas_bytes=512 * 1024):
    """y = sigmoid(x * w + b), elementwise, scalar learnable w/b."""
    orig_shape = x.shape
    orig_is_float = jnp.issubdtype(x.dtype, jnp.floating)
    out_dtype = x.dtype if orig_is_float else jnp.float32  # kernel upcasts ints

    w32 = jnp.asarray(w, jnp.float32)
    b32 = jnp.asarray(b, jnp.float32)

    def _jnp_fallback(arr):
        return jax.nn.sigmoid(arr.astype(jnp.float32) * w32 + b32).astype(out_dtype)

    n = x.size
    itemsize = jnp.dtype(x.dtype).itemsize

    # Tiny tensors: a single fused XLA elementwise op beats pallas_call launch
    # cost + the reshape/stack plumbing.
    if n == 0 or n * itemsize < min_pallas_bytes or n < 128:
        return jnp.reshape(_jnp_fallback(x), orig_shape)

    tile_bytes, vmem_limit, two_core = _tile_config(_device_kind())
    wb = jnp.stack([w32, b32])
    x_flat = jnp.reshape(x, (-1,))

    # Lane-dense slab: widest lane count (multiple of 128) that divides n.
    lanes = next((c for c in _LANE_CHOICES if n % c == 0), None)
    if lanes is not None:
        x2d = jnp.reshape(x_flat, (n // lanes, lanes))
        out2d = _run_pallas_2d(x2d, wb, out_dtype, tile_bytes, vmem_limit, two_core)
        return jnp.reshape(out2d, orig_shape)

    # Ragged n: run the kernel on the 128-aligned prefix and compute the
    # <128-element tail with plain jnp (no full-array pad / slice round trips).
    n_main = (n // 128) * 128
    lanes = next(c for c in _LANE_CHOICES if n_main % c == 0)
    x_main = jnp.reshape(x_flat[:n_main], (n_main // lanes, lanes))
    out_main = _run_pallas_2d(x_main, wb, out_dtype, tile_bytes, vmem_limit, two_core)
    out_tail = _jnp_fallback(x_flat[n_main:])
    out_flat = jnp.concatenate([jnp.reshape(out_main, (-1,)), out_tail])
    return jnp.reshape(out_flat, orig_shape)


if __name__ == "__main__":
    key = jax.random.PRNGKey(0)

    # Deterministic parameter init matching nn.Parameter(tensor(1.0)) / (-0.2).
    w = jnp.float32(1.0)
    b = jnp.float32(-0.2)

    def ref(arr):
        return jax.nn.sigmoid(arr * w + b)

    # Primary small NCHW-like input. Force the Pallas path (it would otherwise
    # take the tiny-input fallback) so the kernel itself is exercised.
    x = jax.random.normal(key, (2, 4, 16, 16), dtype=jnp.float32)
    y = jax.block_until_ready(param_sigmoid(x, w, b, min_pallas_bytes=0))
    assert y.shape == x.shape and y.dtype == x.dtype
    assert jnp.max(jnp.abs(y - ref(x))) < 1e-6

    # Default behaviour on the same tiny input (fused-XLA fallback) must agree.
    y_fb = jax.block_until_ready(param_sigmoid(x, w, b))
    assert y_fb.shape == x.shape and y_fb.dtype == x.dtype
    assert jnp.max(jnp.abs(y_fb - ref(x))) < 1e-6

    # Ragged shape (aligned-prefix kernel + jnp tail, forced through Pallas)
    # and a 1 MiB lane-divisible shape that takes the Pallas path by default.
    for shape, force in (((3, 5, 7, 11), True), ((4, 8, 64, 128), False)):
        k2 = jax.random.fold_in(key, shape[-1])
        x2 = jax.random.normal(k2, shape, dtype=jnp.float32)
        kwargs = {"min_pallas_bytes": 0} if force else {}
        y2 = jax.block_until_ready(param_sigmoid(x2, w, b, **kwargs))
        assert y2.shape == x2.shape and y2.dtype == x2.dtype
        assert jnp.max(jnp.abs(y2 - ref(x2))) < 1e-6

    print("KERNEL_OK")
</pallas_src>

<mosaic_0001>
module attributes {stable_mosaic.version = 11 : i64} {
  func.func @_param_sigmoid_kernel(%arg0: i32, %arg1: memref<2xf32, #tpu.memory_space<smem>>, %arg2: memref<2x1024xf32, #tpu.memory_space<vmem>>, %arg3: memref<2x1024xf32, #tpu.memory_space<vmem>>) attributes {dimension_semantics = [#tpu.dimension_semantics<parallel>], iteration_bounds = array<i64: 1>, scalar_prefetch = 0 : i64, scratch_operands = 0 : i64, tpu.core_type = #tpu.core_type<tc>, window_params = [{transform_indices = @transform_0, window_bounds = array<i64: 2>}, {transform_indices = @transform_1, window_bounds = array<i64: 2, 1024>}, {transform_indices = @transform_2, window_bounds = array<i64: 2, 1024>}]} {
    %c0 = arith.constant 0 : index
    %0 = memref.load %arg1[%c0] : memref<2xf32, #tpu.memory_space<smem>>
    %c1 = arith.constant 1 : index
    %1 = memref.load %arg1[%c1] : memref<2xf32, #tpu.memory_space<smem>>
    %c0_0 = arith.constant 0 : index
    %c0_1 = arith.constant 0 : index
    %2 = vector.load %arg2[%c0_0, %c0_1] : memref<2x1024xf32, #tpu.memory_space<vmem>>, vector<2x1024xf32>
    %3 = vector.broadcast %0 : f32 to vector<2x1024xf32>
    %4 = arith.mulf %2, %3 : vector<2x1024xf32>
    %5 = vector.broadcast %1 : f32 to vector<2x1024xf32>
    %6 = arith.addf %4, %5 : vector<2x1024xf32>
    %7 = arith.negf %6 : vector<2x1024xf32>
    %8 = math.exp %7 : vector<2x1024xf32>
    %cst = arith.constant 1.000000e+00 : f32
    %9 = vector.broadcast %cst : f32 to vector<2x1024xf32>
    %10 = arith.addf %9, %8 : vector<2x1024xf32>
    %11 = arith.divf %9, %10 : vector<2x1024xf32>
    %c0_2 = arith.constant 0 : index
    %c0_3 = arith.constant 0 : index
    %12 = vector.load %arg3[%c0_2, %c0_3] : memref<2x1024xf32, #tpu.memory_space<vmem>>, vector<2x1024xf32>
    tpu.vector_store %arg3[%c0_2, %c0_3], %11 {strides = array<i32>} : memref<2x1024xf32, #tpu.memory_space<vmem>>, vector<2x1024xf32>,
    return
  }
  func.func @transform_0(%arg0: i32) -> i32 {
    %c0_i32 = arith.constant 0 : i32
    %c0_i32_0 = arith.constant 0 : i32
    return %c0_i32 : i32
  }
  func.func @transform_1(%arg0: i32) -> (i32, i32) {
    %c0_i32 = arith.constant 0 : i32
    %c0_i32_0 = arith.constant 0 : i32
    return %arg0, %c0_i32 : i32, i32
  }
  func.func @transform_2(%arg0: i32) -> (i32, i32) {
    %c0_i32 = arith.constant 0 : i32
    %c0_i32_0 = arith.constant 0 : i32
    return %arg0, %c0_i32 : i32, i32
  }
}

</mosaic_0001>

<bundles_post_ra>
// kernel: tpu_custom_call.1
= control target key start
LH: loop header
LB: loop body
LE: loop exit
PB: predicated region body
PF: predicated region fallthrough
CT: control target
= control target key end

     0   :  { %7 = vsyncpa [#allocation5], 0  ;;  %s214_s0 = inlined_call_operand.hbm [shape: f32[2], index: 0, kind: input, shape index: {}]   ;;  %s215_s1 = inlined_call_operand.hbm [shape: f32[2,1024], index: 1, kind: input, shape index: {}]   ;;  %s216_s2 = inlined_call_operand.hbm [shape: f32[2,1024], index: 2, kind: output, shape index: {}]  }
   0x1   :  { %8 = vsyncpa [#allocation3], 0 }
   0x2   :  { %9 = vsyncpa [#allocation4], 0  ;;  %s15_s11 = sshll.u32 %s214_s0, 4  ;;  %s24_s14 = sshll.u32 %s215_s1, 4  ;;  %s16_s11 = int_to_ptr.hbm [resolvable:$true] %s15_s11  ;;  %s25_s14 = int_to_ptr.hbm [resolvable:$true] %s24_s14 }
   0x3   :  { %s187_s15 = smov [#allocation2]   ;;  %s188_s16 = smov [#allocation6]  }
   0x4   :  { %18 = dma.hbm_to_smem %s16_s11, 16, %s187_s15, [#allocation5]  }
   0x5   :  { %s26_s17 = sshll.u32 %s188_s16, 4  ;;  %s27_s17 = int_to_ptr.vmem [resolvable:$true] %s26_s17 }
   0x6   :  { %29 = dma.hbm_to_vmem [thread:$0]  %s25_s14, 256, %s27_s17, [#allocation3]  }
   0x7   :  { %181 = dma.done.wait [#allocation5], 16  }
   0x8   :  { %182 = vsyncadd [#allocation5], 4294967280 }
   0x9   :  { %183 = dma.done.wait [#allocation3], 256  }
   0xa   :  { %184 = vsyncadd [#allocation3], 4294967040 }
   0xb   :  { %38 = sfence }
   0xc   :  { %s39_s18 = sld [smem:[#allocation2]]  ;;  %v41_v0 = vld [vmem:[#allocation6] sm:$0xff]  ;;  %v42_v1 = vld [vmem:[#allocation6 + $0x8] sm:$0xff]  ;;  %s189_s0 = smov [#allocation7]  }
   0xd   :  { %s107_s19 = sld [smem:[#allocation2 + $0x1]]  ;;  %s94_s1 = sshll.u32 %s189_s0, 4  ;;  %s95_s1 = int_to_ptr.vmem [resolvable:$true] %s94_s1 }
   0xe   :  { %s96_s22 = sshll.u32 %s216_s2, 4  ;;  %s97_s22 = int_to_ptr.hbm [resolvable:$true] %s96_s22 }
  0x12   :  { %v43_v2 = vstv %s39_s18 }
  0x13   :  { %v44_v3 = vmul.f32 %v43_v2, %v41_v0  ;;  %v46_v4 = vstv %s107_s19  ;;  %v45_v5 = vmul.f32 %v43_v2, %v42_v1 }
  0x15   :  { %v47_v6 = vadd.f32 %v46_v4, %v44_v3  ;;  %v48_v7 = vadd.f32 %v46_v4, %v45_v5 }
  0x17   :  { %v108_v8 = vmul.f32 -1.442695, %v47_v6  ;;  %v109_v9 = vmul.f32 -1.442695, %v48_v7 }
  0x19   :  { %113 = vpow2.f32 %v108_v8 }
  0x1a   :  { %115 = vpow2.f32 %v109_v9 }
  0x1f   :  { %v114_v10 = vpop.eup %113 }
  0x20   :  { %v116_v11 = vpop.eup %115  ;;  %v55_v12 = vadd.f32 1.0, %v114_v10 }
  0x21   :  { %v56_v13 = vadd.f32 1.0, %v116_v11 }
  0x22   :  { %117 = vrcp.f32 %v55_v12  ;;  %vm62_vm0 = vweird.f32 %v55_v12  ;;  %v68_v17 = vand.u32 2147483648, %v55_v12  ;;  %v66_v20 = vand.u32 2147483647, %v55_v12 }
  0x23   :  { %119 = vrcp.f32 %v56_v13  ;;  %v83_v21 = vand.u32 2147483648, %v56_v13  ;;  %vm77_vm2 = vweird.f32 %v56_v13  ;;  %v81_v23 = vand.u32 2147483647, %v56_v13 }
  0x24   :  { %v69_v25 = vor.u32 1.1754944e-38, %v68_v17  ;;  %vm67_vm5 = vcmp.eq.f32.partialorder %v66_v20, 8.507059e+37 }
  0x25   :  { %v84_v28 = vor.u32 1.1754944e-38, %v83_v21  ;;  %vm82_vm7 = vcmp.eq.f32.partialorder %v81_v23, 8.507059e+37 }
  0x28   :  { %v118_v14 = vpop.eup %117 }
  0x29   :  { %v120_v15 = vpop.eup %119  ;;  %v58_v16 = vmul.f32 %v118_v14, %v55_v12  ;;  %vm63_vm1 = vweird.f32 %v118_v14 }
  0x2a   :  { %v73_v18 = vmul.f32 %v120_v15, %v56_v13  ;;  %vm78_vm3 = vweird.f32 %v120_v15  ;;  %vm64_vm4 = vmor %vm62_vm0, %vm63_vm1 }
  0x2b   :  { %v59_v19 = vsub.f32 1.0, %v58_v16  ;;  %vm79_vm6 = vmor %vm77_vm2, %vm78_vm3 }
  0x2c   :  { %v74_v22 = vsub.f32 1.0, %v73_v18 }
  0x2d   :  { %v60_v24 = vmul.f32 %v118_v14, %v59_v19 }
  0x2e   :  { %v75_v26 = vmul.f32 %v120_v15, %v74_v22 }
  0x2f   :  { %v61_v27 = vadd.f32 %v118_v14, %v60_v24 }
  0x30   :  { %v76_v29 = vadd.f32 %v120_v15, %v75_v26 }
  0x31   :  { %v65_v30 = vsel %vm64_vm4, %v118_v14, %v61_v27 }
  0x32   :  { %v70_v31 = vsel %vm67_vm5, %v69_v25, %v65_v30  ;;  %v80_v32 = vsel %vm79_vm6, %v120_v15, %v76_v29 }
  0x33   :  { %87 = vst [vmem:[#allocation7] sm:$0xff] %v70_v31  ;;  %v85_v33 = vsel %vm82_vm7, %v84_v28, %v80_v32 }
  0x34   :  { %88 = vst [vmem:[#allocation7 + $0x8] sm:$0xff] %v85_v33 }
  0x35   :  { %99 = dma.vmem_to_hbm [thread:$0]  %s95_s1, 256, %s97_s22, [#allocation4]  }
  0x36   :  { %185 = dma.done.wait [#allocation4], 256  }
  0x37   :  { %186 = vsyncadd [#allocation4], 4294967040 }
  0x38   :  { %104 = vsyncpa [#allocation3], 1 }
  0x39   :  { %105 = vsyncpa [#allocation4], 1 }
  0x3a   :  { %106 = vsyncpa [#allocation5], 1 }

</bundles_post_ra>
